<compile_context>
chip_gen: v7x
topology: tpu7x:2x2x1
jax: 0.10.0
libtpu: 0.0.40
codegen_flags: <defaults>
</compile_context>

<pallas_src>
import jax
import jax.numpy as jnp
from jax.experimental import pallas as pl
from jax.experimental.pallas import tpu as pltpu


_MAX_LANE_WIDTH = 2048                   # search exact divisors 2048 -> 128
_DEFAULT_BLOCK_ELEMS = 2 * 1024 * 1024   # ~8 MiB f32 output per grid step
_VMEM_LIMIT_BYTES = 32 * 1024 * 1024     # explicit (v5e default scoped = 16 MiB)
_SUBLANE_ROUND = 32                      # uint8 native sublane packing (32,128)
_MIN_MEGACORE_STEPS = 4                  # v7x: keep both TensorCores busy


def _u8_scale_kernel(x_ref, o_ref):
    """uint8 -> float32 * (1/255) on one lane-dense (rows, lanes) tile."""
    # Constant-reciprocal multiply (single VALU op) instead of a vector divide.
    o_ref[...] = x_ref[...].astype(jnp.float32) * jnp.float32(1.0 / 255.0)


def _round_up(x, m):
    return ((x + m - 1) // m) * m


def _choose_tiling(total, block_elems):
    """Pick (lane_width, rows, rows_per_block, padded_total) for a flat stream."""
    # Largest multiple-of-128 lane width that exactly divides `total`
    # (avoids any output-side slice); pad the cheap uint8 input only if no
    # such divisor exists.
    lane_width = None
    for cand in range(_MAX_LANE_WIDTH, 127, -128):
        if total % cand == 0:
            lane_width = cand
            break
    if lane_width is None:
        lane_width = 128
        padded_total = _round_up(total, lane_width)
    else:
        padded_total = total

    rows = padded_total // lane_width
    if rows <= _SUBLANE_ROUND:
        # Tiny image: single full-extent block.
        return lane_width, rows, rows, padded_total

    # Rows per grid step: multiple of 32 sublanes, sized to ~block_elems elems.
    target_rows = max(_SUBLANE_ROUND,
                      (max(block_elems // lane_width, _SUBLANE_ROUND)
                       // _SUBLANE_ROUND) * _SUBLANE_ROUND)
    # Megacore (v7x): guarantee >= _MIN_MEGACORE_STEPS grid steps when possible.
    min_steps_rows = _round_up(pl.cdiv(rows, _MIN_MEGACORE_STEPS),
                               _SUBLANE_ROUND)
    rows_per_block = max(_SUBLANE_ROUND,
                         min(rows, target_rows, min_steps_rows))
    return lane_width, rows, rows_per_block, padded_total


def to_tensor(img, *, block_elems=_DEFAULT_BLOCK_ELEMS):
    """Equivalent of transforms.functional.to_tensor for an ndarray image.

    img: (H, W, C) or (H, W) array. uint8 -> float32 scaled to [0, 1];
         any other dtype -> permuted to CHW only (dtype preserved, no rescale),
         matching torchvision's ndarray semantics.
    returns: (C, H, W) tensor.
    """
    if img.ndim == 2:
        img = img[:, :, None]
    if img.ndim != 3:
        raise ValueError(f"expected HxW or HxWxC image, got shape {img.shape}")
    H, W, C = img.shape

    if img.dtype != jnp.dtype(jnp.uint8):
        # Passthrough path: pure layout permute, no rescale, dtype preserved.
        # Skipping Pallas avoids a pointless identity copy (extra 2x HBM trip).
        return jnp.transpose(img, (2, 0, 1))

    # HWC -> CHW de-interleave on the cheap uint8 side (see TODO above), then
    # free contiguous reshapes into a lane-dense 2-D slab for the kernel.
    chw = jnp.transpose(img, (2, 0, 1))
    total = C * H * W
    lane_width, rows, rows_per_block, padded_total = _choose_tiling(
        total, block_elems)

    flat = chw.reshape(-1)
    if padded_total != total:
        # Rare irregular size: pad the 1-byte input stream only.
        flat = jnp.pad(flat, (0, padded_total - total))
    slab = flat.reshape(rows, lane_width)

    grid = (pl.cdiv(rows, rows_per_block),)

    out2d = pl.pallas_call(
        _u8_scale_kernel,
        out_shape=jax.ShapeDtypeStruct((rows, lane_width), jnp.float32),
        grid=grid,
        in_specs=[pl.BlockSpec((rows_per_block, lane_width), lambda i: (i, 0))],
        out_specs=pl.BlockSpec((rows_per_block, lane_width), lambda i: (i, 0)),
        compiler_params=pltpu.CompilerParams(
            dimension_semantics=("parallel",),
            vmem_limit_bytes=_VMEM_LIMIT_BYTES,
        ),
        cost_estimate=pl.CostEstimate(
            flops=total,
            transcendentals=0,
            bytes_accessed=total * 5,   # 1 B uint8 read + 4 B f32 write / elem
        ),
    )(slab)

    out_flat = out2d.reshape(-1)
    if padded_total != total:
        # TODO(synk): only hit when no multiple-of-128 divides C*H*W; the f32
        # slice here is the remaining overhead on truly irregular sizes.
        out_flat = out_flat[:total]
    return out_flat.reshape(C, H, W)


if __name__ == "__main__":
    key = jax.random.PRNGKey(0)
    k1, k2, k3, k4, k5 = jax.random.split(key, 5)

    def _u8(k, shape):
        return jax.random.randint(k, shape, 0, 256, dtype=jnp.int32).astype(
            jnp.uint8)

    def _ref(img_u8):
        if img_u8.ndim == 2:
            img_u8 = img_u8[:, :, None]
        return jnp.transpose(img_u8.astype(jnp.float32) / 255.0, (2, 0, 1))

    # 1) Small RGB uint8 HWC image (single-step grid).
    img = _u8(k1, (128, 64, 3))
    out = jax.block_until_ready(to_tensor(img))
    assert out.shape == (3, 128, 64) and out.dtype == jnp.float32
    assert jnp.max(jnp.abs(out - _ref(img))) < 1e-6

    # 2) Shape forcing a multi-step grid with a partial edge block
    #    (rows=100, rows_per_block=32 -> 4 "parallel" grid steps).
    img2 = _u8(k2, (256, 250, 3))
    out2 = jax.block_until_ready(to_tensor(img2))
    assert jnp.max(jnp.abs(out2 - _ref(img2))) < 1e-6

    # 3) Irregular element count (no multiple-of-128 divisor -> input-pad path).
    img3 = _u8(k3, (37, 23, 3))
    out3 = jax.block_until_ready(to_tensor(img3))
    assert out3.shape == (3, 37, 23)
    assert jnp.max(jnp.abs(out3 - _ref(img3))) < 1e-6

    # 4) Grayscale 2-D uint8 image.
    img4 = _u8(k4, (32, 40))
    out4 = jax.block_until_ready(to_tensor(img4))
    assert out4.shape == (1, 32, 40)
    assert jnp.max(jnp.abs(out4 - _ref(img4))) < 1e-6

    # 5) Float passthrough (permute only, dtype preserved, no Pallas call).
    imgf = jax.random.uniform(k5, (128, 64, 3), dtype=jnp.float32)
    outf = jax.block_until_ready(to_tensor(imgf))
    assert outf.dtype == jnp.float32 and outf.shape == (3, 128, 64)
    assert jnp.array_equal(outf, jnp.transpose(imgf, (2, 0, 1)))

    print("KERNEL_OK")
</pallas_src>

<mosaic_0001>
module attributes {stable_mosaic.version = 11 : i64} {
  func.func @_u8_scale_kernel(%arg0: i32, %arg1: memref<12x2048xi8, #tpu.memory_space<vmem>>, %arg2: memref<12x2048xf32, #tpu.memory_space<vmem>>) attributes {dimension_semantics = [#tpu.dimension_semantics<parallel>], iteration_bounds = array<i64: 1>, scalar_prefetch = 0 : i64, scratch_operands = 0 : i64, tpu.core_type = #tpu.core_type<tc>, window_params = [{transform_indices = @transform_0, window_bounds = array<i64: 12, 2048>}, {transform_indices = @transform_1, window_bounds = array<i64: 12, 2048>}]} {
    %c0 = arith.constant 0 : index
    %c0_0 = arith.constant 0 : index
    %0 = vector.load %arg1[%c0, %c0_0] : memref<12x2048xi8, #tpu.memory_space<vmem>>, vector<12x2048xi8>
    %1 = arith.uitofp %0 : vector<12x2048xi8> to vector<12x2048xf32>
    %cst = arith.constant 0.00392156886 : f32
    %2 = vector.broadcast %cst : f32 to vector<12x2048xf32>
    %3 = arith.mulf %1, %2 : vector<12x2048xf32>
    %c0_1 = arith.constant 0 : index
    %c0_2 = arith.constant 0 : index
    %4 = vector.load %arg2[%c0_1, %c0_2] : memref<12x2048xf32, #tpu.memory_space<vmem>>, vector<12x2048xf32>
    tpu.vector_store %arg2[%c0_1, %c0_2], %3 {strides = array<i32>} : memref<12x2048xf32, #tpu.memory_space<vmem>>, vector<12x2048xf32>,
    return
  }
  func.func @transform_0(%arg0: i32) -> (i32, i32) {
    %c0_i32 = arith.constant 0 : i32
    %c0_i32_0 = arith.constant 0 : i32
    return %arg0, %c0_i32 : i32, i32
  }
  func.func @transform_1(%arg0: i32) -> (i32, i32) {
    %c0_i32 = arith.constant 0 : i32
    %c0_i32_0 = arith.constant 0 : i32
    return %arg0, %c0_i32 : i32, i32
  }
}

</mosaic_0001>

<bundles_post_ra>
// kernel: tpu_custom_call.1
= control target key start
LH: loop header
LB: loop body
LE: loop exit
PB: predicated region body
PF: predicated region fallthrough
CT: control target
= control target key end

     0   :  { %6 = vsyncpa [#allocation3], 0  ;;  %s302_s0 = inlined_call_operand.hbm [shape: u8[12,2048], index: 0, kind: input, shape index: {}]   ;;  %s303_s1 = inlined_call_operand.hbm [shape: f32[12,2048], index: 1, kind: output, shape index: {}]  }
   0x1   :  { %7 = vsyncpa [#allocation4], 0  ;;  %s262_s6 = smov [#allocation2]   ;;  %s214_s10 = scalar_lea.hbm %s302_s0, 1024 }
   0x2   :  { %s13_s7 = sshll.u32 %s262_s6, 4  ;;  %p215_p0 = scmp.ne.s32.totalorder %s302_s0, %s214_s10  ;;  %s14_s7 = int_to_ptr.vmem [resolvable:$true] %s13_s7 }
   0x3   :  { %p218_p1 = scmp.lt.u32.totalorder %s214_s10, %s302_s0 }
   0x5   :  { %p220_p2 = pnand %p218_p1, %p215_p0 }
   0x7   :  { %223 = shalt.err (!%p220_p2)
}
   0x8   :  { %s224_s15 = scalar_lea.vmem %s14_s7, 1024  ;;  %p229_p4 = scmp.lt.s32.totalorder %s14_s7, %s14_s7 }
   0x9   :  { %p225_p3 = scmp.ne.s32.totalorder %s14_s7, %s224_s15  ;;  %p230_p5 = scmp.lt.s32.totalorder %s224_s15, %s224_s15 }
   0xb   :  { %p231_p6 = por %p230_p5, %p229_p4 }
   0xd   :  { %p232_p7 = pnand %p231_p6, %p225_p3 }
   0xf   :  { %235 = shalt.err (!%p232_p7)
}
  0x10   :  { %s263_s16 = smov 512   ;;  %s264_s17 = smov 32  }
  0x11   :  { %19 = dma.hbm_to_vmem [thread:$0]  %s302_s0, 1024, %s14_s7, [#allocation3], %s263_s16, %s263_s16, %s264_s17  }
  0x12   :  { %258 = dma.done.wait [#allocation3], 1024  }
  0x13   :  { %259 = vsyncadd [#allocation3], 4294966272  ;;  %v23_v0 = vld [vmem:[#allocation2] sm:$0xff]  ;;  %v24_v1 = vld [vmem:[#allocation2 + $0x8] sm:$0xff]  ;;  %s265_s0 = smov [#allocation5]  }
  0x14   :  { %v31_v2 = vunpack.c.0.s8 %v23_v0  ;;  %v32_v3 = vunpack.c.1.s8 %v23_v0  ;;  %v33_v4 = vunpack.c.2.s8 %v23_v0  ;;  %v34_v5 = vunpack.c.3.s8 %v23_v0  ;;  %v25_v18 = vld [vmem:[#allocation2 + $0x10] sm:$0xff]  ;;  %v26_v27 = vld [vmem:[#allocation2 + $0x18] sm:$0xff]  ;;  %v27_v52 = vld [vmem:[#allocation2 + $0x20] sm:$0x55]  ;;  %s196_s20 = sshll.u32 %s265_s0, 4  ;;  %s197_s20 = int_to_ptr.vmem [resolvable:$true] %s196_s20 }
  0x15   :  { %v35_v6 = vunpack.c.0.s8 %v24_v1  ;;  %v36_v7 = vunpack.c.1.s8 %v24_v1  ;;  %v37_v8 = vunpack.c.2.s8 %v24_v1  ;;  %v38_v9 = vunpack.c.3.s8 %v24_v1  ;;  %v28_v1 = vld [vmem:[#allocation2 + $0x28] sm:$0x55]  ;;  %s236_s21 = scalar_lea.vmem %s197_s20, 4096  ;;  %p241_p9 = scmp.lt.s32.totalorder %s197_s20, %s197_s20 }
  0x16   :  { %v63_v10 = vand.u32 255, %v31_v2  ;;  %v64_v11 = vand.u32 255, %v32_v3  ;;  %v65_v12 = vand.u32 255, %v33_v4  ;;  %v66_v13 = vand.u32 255, %v34_v5  ;;  %p237_p8 = scmp.ne.s32.totalorder %s197_s20, %s236_s21  ;;  %p242_p10 = scmp.lt.s32.totalorder %s236_s21, %s236_s21 }
  0x17   :  { %v67_v14 = vand.u32 255, %v35_v6  ;;  %v68_v15 = vand.u32 255, %v36_v7  ;;  %v69_v16 = vand.u32 255, %v37_v8  ;;  %v70_v17 = vand.u32 255, %v38_v9 }
  0x18   :  { %v95_v19 = vcvt.s32.f32 %v63_v10  ;;  %v96_v20 = vcvt.s32.f32 %v64_v11  ;;  %v97_v21 = vcvt.s32.f32 %v65_v12  ;;  %v98_v22 = vcvt.s32.f32 %v66_v13  ;;  %p243_p11 = por %p242_p10, %p241_p9 }
  0x19   :  { %v99_v23 = vcvt.s32.f32 %v67_v14  ;;  %v100_v24 = vcvt.s32.f32 %v68_v15  ;;  %v101_v25 = vcvt.s32.f32 %v69_v16  ;;  %v102_v26 = vcvt.s32.f32 %v70_v17 }
  0x1a   :  { %v127_v28 = vmul.f32 0.003921569, %v95_v19  ;;  %v128_v29 = vmul.f32 0.003921569, %v96_v20  ;;  %v129_v30 = vmul.f32 0.003921569, %v97_v21  ;;  %v39_v31 = vunpack.c.0.s8 %v25_v18  ;;  %p244_p12 = pnand %p243_p11, %p237_p8 }
  0x1b   :  { %v130_v32 = vmul.f32 0.003921569, %v98_v22  ;;  %v131_v33 = vmul.f32 0.003921569, %v99_v23  ;;  %v132_v34 = vmul.f32 0.003921569, %v100_v24  ;;  %v40_v35 = vunpack.c.1.s8 %v25_v18 }
  0x1c   :  { %159 = vst [vmem:[#allocation5] sm:$0xff] %v127_v28  ;;  %160 = vst [vmem:[#allocation5 + $0x8] sm:$0xff] %v128_v29  ;;  %v133_v36 = vmul.f32 0.003921569, %v101_v25  ;;  %v134_v37 = vmul.f32 0.003921569, %v102_v26  ;;  %v41_v39 = vunpack.c.2.s8 %v25_v18  ;;  %v42_v41 = vunpack.c.3.s8 %v25_v18 }
  0x1d   :  { %161 = vst [vmem:[#allocation5 + $0x10] sm:$0xff] %v129_v30  ;;  %v71_v38 = vand.u32 255, %v39_v31  ;;  %162 = vst [vmem:[#allocation5 + $0x18] sm:$0xff] %v130_v32  ;;  %v72_v40 = vand.u32 255, %v40_v35  ;;  %v43_v42 = vunpack.c.0.s8 %v26_v27  ;;  %v44_v43 = vunpack.c.1.s8 %v26_v27  ;;  %v29_v22 = vld [vmem:[#allocation2 + $0x30] sm:$0x55] }
  0x1e   :  { %163 = vst [vmem:[#allocation5 + $0x20] sm:$0xff] %v131_v33  ;;  %164 = vst [vmem:[#allocation5 + $0x28] sm:$0xff] %v132_v34  ;;  %v73_v45 = vand.u32 255, %v41_v39  ;;  %v45_v46 = vunpack.c.2.s8 %v26_v27  ;;  %v46_v47 = vunpack.c.3.s8 %v26_v27  ;;  %v74_v49 = vand.u32 255, %v42_v41  ;;  %v30_v35 = vld [vmem:[#allocation2 + $0x38] sm:$0x55] }
  0x1f   :  { %165 = vst [vmem:[#allocation5 + $0x30] sm:$0xff] %v133_v36  ;;  %166 = vst [vmem:[#allocation5 + $0x38] sm:$0xff] %v134_v37  ;;  %v103_v44 = vcvt.s32.f32 %v71_v38  ;;  %v104_v48 = vcvt.s32.f32 %v72_v40  ;;  %v75_v50 = vand.u32 255, %v43_v42  ;;  %v76_v51 = vand.u32 255, %v44_v43 }
  0x20   :  { %v105_v54 = vcvt.s32.f32 %v73_v45  ;;  %v77_v55 = vand.u32 255, %v45_v46  ;;  %v78_v56 = vand.u32 255, %v46_v47  ;;  %v106_v58 = vcvt.s32.f32 %v74_v49 }
  0x21   :  { %v135_v53 = vmul.f32 0.003921569, %v103_v44  ;;  %v136_v57 = vmul.f32 0.003921569, %v104_v48  ;;  %v107_v59 = vcvt.s32.f32 %v75_v50  ;;  %v108_v60 = vcvt.s32.f32 %v76_v51 }
  0x22   :  { %v137_v61 = vmul.f32 0.003921569, %v105_v54  ;;  %v109_v62 = vcvt.s32.f32 %v77_v55  ;;  %v110_v63 = vcvt.s32.f32 %v78_v56  ;;  %v47_v0 = vunpack.c.0.s8 %v27_v52 }
  0x23   :  { %167 = vst [vmem:[#allocation5 + $0x40] sm:$0xff] %v135_v53  ;;  %168 = vst [vmem:[#allocation5 + $0x48] sm:$0xff] %v136_v57  ;;  %v138_v2 = vmul.f32 0.003921569, %v106_v58  ;;  %v139_v3 = vmul.f32 0.003921569, %v107_v59  ;;  %v48_v5 = vunpack.c.1.s8 %v27_v52  ;;  %v49_v9 = vunpack.c.2.s8 %v27_v52 }
  0x24   :  { %v140_v4 = vmul.f32 0.003921569, %v108_v60  ;;  %169 = vst [vmem:[#allocation5 + $0x50] sm:$0xff] %v137_v61  ;;  %v141_v6 = vmul.f32 0.003921569, %v109_v62  ;;  %v79_v8 = vand.u32 255, %v47_v0  ;;  %v50_v11 = vunpack.c.3.s8 %v27_v52 }
  0x25   :  { %v142_v7 = vmul.f32 0.003921569, %v110_v63  ;;  %170 = vst [vmem:[#allocation5 + $0x58] sm:$0xff] %v138_v2  ;;  %171 = vst [vmem:[#allocation5 + $0x60] sm:$0xff] %v139_v3  ;;  %v80_v10 = vand.u32 255, %v48_v5  ;;  %v51_v12 = vunpack.c.0.s8 %v28_v1  ;;  %v52_v13 = vunpack.c.1.s8 %v28_v1 }
  0x26   :  { %172 = vst [vmem:[#allocation5 + $0x68] sm:$0xff] %v140_v4  ;;  %173 = vst [vmem:[#allocation5 + $0x70] sm:$0xff] %v141_v6  ;;  %v111_v14 = vcvt.s32.f32 %v79_v8  ;;  %v81_v15 = vand.u32 255, %v49_v9  ;;  %v53_v16 = vunpack.c.2.s8 %v28_v1  ;;  %v54_v17 = vunpack.c.3.s8 %v28_v1 }
  0x27   :  { %174 = vst [vmem:[#allocation5 + $0x78] sm:$0xff] %v142_v7  ;;  %v112_v18 = vcvt.s32.f32 %v80_v10  ;;  %v82_v19 = vand.u32 255, %v50_v11  ;;  %v83_v20 = vand.u32 255, %v51_v12  ;;  %v84_v21 = vand.u32 255, %v52_v13 }
  0x28   :  { %v143_v23 = vmul.f32 0.003921569, %v111_v14  ;;  %v113_v24 = vcvt.s32.f32 %v81_v15  ;;  %v85_v25 = vand.u32 255, %v53_v16  ;;  %v86_v26 = vand.u32 255, %v54_v17 }
  0x29   :  { %v144_v27 = vmul.f32 0.003921569, %v112_v18  ;;  %v114_v28 = vcvt.s32.f32 %v82_v19  ;;  %v115_v29 = vcvt.s32.f32 %v83_v20  ;;  %v116_v30 = vcvt.s32.f32 %v84_v21 }
  0x2a   :  { %175 = vst [vmem:[#allocation5 + $0x80] sm:$0xf] %v143_v23  ;;  %v145_v31 = vmul.f32 0.003921569, %v113_v24  ;;  %v117_v32 = vcvt.s32.f32 %v85_v25  ;;  %v118_v33 = vcvt.s32.f32 %v86_v26  ;;  %v55_v34 = vunpack.c.0.s8 %v29_v22 }
  0x2b   :  { %176 = vst [vmem:[#allocation5 + $0x88] sm:$0xf] %v144_v27  ;;  %v146_v36 = vmul.f32 0.003921569, %v114_v28  ;;  %v147_v37 = vmul.f32 0.003921569, %v115_v29  ;;  %v56_v39 = vunpack.c.1.s8 %v29_v22  ;;  %v57_v43 = vunpack.c.2.s8 %v29_v22 }
  0x2c   :  { %v148_v38 = vmul.f32 0.003921569, %v116_v30  ;;  %177 = vst [vmem:[#allocation5 + $0x90] sm:$0xf] %v145_v31  ;;  %v149_v40 = vmul.f32 0.003921569, %v117_v32  ;;  %v58_v45 = vunpack.c.3.s8 %v29_v22  ;;  %v59_v46 = vunpack.c.0.s8 %v30_v35 }
  0x2d   :  { %v150_v41 = vmul.f32 0.003921569, %v118_v33  ;;  %v87_v42 = vand.u32 255, %v55_v34  ;;  %178 = vst [vmem:[#allocation5 + $0x98] sm:$0xf] %v146_v36  ;;  %v88_v44 = vand.u32 255, %v56_v39  ;;  %v60_v47 = vunpack.c.1.s8 %v30_v35 }
  0x2e   :  { %179 = vst [vmem:[#allocation5 + $0xa0] sm:$0xf] %v147_v37  ;;  %180 = vst [vmem:[#allocation5 + $0xa8] sm:$0xf] %v148_v38  ;;  %v89_v49 = vand.u32 255, %v57_v43  ;;  %v61_v50 = vunpack.c.2.s8 %v30_v35  ;;  %v62_v51 = vunpack.c.3.s8 %v30_v35  ;;  %v90_v53 = vand.u32 255, %v58_v45 }
  0x2f   :  { %181 = vst [vmem:[#allocation5 + $0xb0] sm:$0xf] %v149_v40  ;;  %182 = vst [vmem:[#allocation5 + $0xb8] sm:$0xf] %v150_v41  ;;  %v119_v48 = vcvt.s32.f32 %v87_v42  ;;  %v120_v52 = vcvt.s32.f32 %v88_v44  ;;  %v91_v54 = vand.u32 255, %v59_v46  ;;  %v92_v55 = vand.u32 255, %v60_v47 }
  0x30   :  { %v121_v57 = vcvt.s32.f32 %v89_v49  ;;  %v93_v58 = vand.u32 255, %v61_v50  ;;  %v94_v59 = vand.u32 255, %v62_v51  ;;  %v122_v61 = vcvt.s32.f32 %v90_v53 }
  0x31   :  { %v151_v56 = vmul.f32 0.003921569, %v119_v48  ;;  %v152_v60 = vmul.f32 0.003921569, %v120_v52  ;;  %v123_v62 = vcvt.s32.f32 %v91_v54  ;;  %v124_v63 = vcvt.s32.f32 %v92_v55 }
  0x32   :  { %v153_v0 = vmul.f32 0.003921569, %v121_v57  ;;  %v125_v1 = vcvt.s32.f32 %v93_v58  ;;  %v126_v2 = vcvt.s32.f32 %v94_v59  ;;  %v154_v3 = vmul.f32 0.003921569, %v122_v61 }
  0x33   :  { %183 = vst [vmem:[#allocation5 + $0xc0] sm:$0xf] %v151_v56  ;;  %184 = vst [vmem:[#allocation5 + $0xc8] sm:$0xf] %v152_v60  ;;  %v155_v4 = vmul.f32 0.003921569, %v123_v62 }
  0x34   :  { %v156_v5 = vmul.f32 0.003921569, %v124_v63  ;;  %185 = vst [vmem:[#allocation5 + $0xd0] sm:$0xf] %v153_v0  ;;  %v157_v6 = vmul.f32 0.003921569, %v125_v1 }
  0x35   :  { %v158_v7 = vmul.f32 0.003921569, %v126_v2  ;;  %186 = vst [vmem:[#allocation5 + $0xd8] sm:$0xf] %v154_v3  ;;  %187 = vst [vmem:[#allocation5 + $0xe0] sm:$0xf] %v155_v4 }
  0x36   :  { %188 = vst [vmem:[#allocation5 + $0xe8] sm:$0xf] %v156_v5  ;;  %189 = vst [vmem:[#allocation5 + $0xf0] sm:$0xf] %v157_v6 }
  0x37   :  { %190 = vst [vmem:[#allocation5 + $0xf8] sm:$0xf] %v158_v7 }
  0x38   :  { %247 = shalt.err (!%p244_p12)
}
  0x39   :  { %s248_s24 = scalar_lea.hbm %s303_s1, 4096 }
  0x3a   :  { %p249_p13 = scmp.ne.s32.totalorder %s303_s1, %s248_s24  ;;  %p252_p0 = scmp.lt.u32.totalorder %s248_s24, %s303_s1 }
  0x3c   :  { %p254_p1 = pnand %p252_p0, %p249_p13 }
  0x3e   :  { %257 = shalt.err (!%p254_p1)
}
  0x3f   :  { %s266_s29 = smov 2048   ;;  %s267_s30 = smov 128  }
  0x40   :  { %202 = dma.vmem_to_hbm [thread:$0]  %s197_s20, 4096, %s303_s1, [#allocation4], %s266_s29, %s266_s29, %s267_s30  }
  0x41   :  { %260 = dma.done.wait [#allocation4], 4096  }
  0x42   :  { %261 = vsyncadd [#allocation4], 4294963200 }
  0x43   :  { %206 = vsyncpa [#allocation3], 1 }
  0x44   :  { %207 = vsyncpa [#allocation4], 1 }

</bundles_post_ra>
